<compile_context>
chip_gen: v6e
topology: v6e:2x2x1
jax: 0.10.0
libtpu: 0.0.40
codegen_flags: <defaults>
</compile_context>

<pallas_src>
import functools

import jax
import jax.numpy as jnp
from jax.experimental import pallas as pl
from jax.experimental.pallas import tpu as pltpu


# --------------------------------------------------------------------------
# Fused kernel: one grid step per channel; cross terms with all previous
# channels are accumulated immediately, D never leaves VMEM.
# --------------------------------------------------------------------------
def _cor_loss_kernel(x_ref, out_ref, d_all_ref, dcov_ref):
    c = pl.program_id(0)

    @pl.when(c == 0)
    def _():
        out_ref[...] = jnp.zeros_like(out_ref)

    x = x_ref[0].astype(jnp.float32)                     # (N, channel_size)
    n = x.shape[0]
    inv_n = 1.0 / jnp.float32(n)
    inv_n2 = inv_n * inv_n

    # ---- pairwise Euclidean distance matrix (Gram on the MXU) -------------
    xsq = x * x
    r_col = jnp.sum(xsq, axis=1, keepdims=True)          # (N, 1) row norms
    ones_row = jnp.ones((1, x.shape[1]), jnp.float32)
    r_row = jax.lax.dot_general(                         # (1, N) == r_col.T
        ones_row, xsq,
        dimension_numbers=(((1,), (1,)), ((), ())),
        preferred_element_type=jnp.float32)
    gram = jax.lax.dot_general(                          # (N, N), canonical A.B^T
        x, x,
        dimension_numbers=(((1,), (1,)), ((), ())),
        preferred_element_type=jnp.float32)

    d = jnp.sqrt(jnp.maximum(r_col - 2.0 * gram + r_row, 0.0) + 1e-8)

    # ---- double centering; grand mean reuses the row sums (one less pass) -
    row_sum = jnp.sum(d, axis=1, keepdims=True)          # (N, 1)
    col_sum = jnp.sum(d, axis=0, keepdims=True)          # (1, N)
    tot_sum = jnp.sum(row_sum, axis=0, keepdims=True)    # (1, 1)
    d = d - col_sum * inv_n - row_sum * inv_n + tot_sum * inv_n2

    d_all_ref[c] = d                                     # resident VMEM only

    # ---- self distance-covariance (reuse the live centered value) ---------
    s_cc = jnp.sum(jnp.sum(d * d, axis=1, keepdims=True), axis=0, keepdims=True)
    dcov_cc = jnp.sqrt(jnp.maximum(s_cc * inv_n2, 0.0) + 1e-8)   # (1, 1)
    dcov_ref[c] = dcov_cc

    # ---- fuse cross terms with every previously finished channel ----------
    def pair_body(j, acc):
        d_j = d_all_ref[j]                               # (N, N), dynamic index
        s = jnp.sum(jnp.sum(d * d_j, axis=1, keepdims=True),
                    axis=0, keepdims=True) * inv_n2
        dcov_cj = jnp.sqrt(jnp.maximum(s, 0.0) + 1e-8)
        denom = jnp.sqrt(jnp.maximum(dcov_cc * dcov_ref[j], 0.0)) + 1e-10
        return acc + dcov_cj / denom

    acc = jax.lax.fori_loop(0, c, pair_body, jnp.zeros((1, 1), jnp.float32))
    out_ref[...] += acc


def _vmem_capacity_bytes():
    """Generation-aware physical VMEM (per core); conservative fallback."""
    try:
        info = pltpu.get_tpu_info()
        cap = getattr(info, "vmem_capacity_bytes", None)
        if cap:
            return int(cap)
    except Exception:
        pass
    return 64 * 1024 * 1024   # v7x per-TC size as the safe lower bound


# --------------------------------------------------------------------------
# Wrapper: equivalent of Cor_loss.forward(embedding).
# --------------------------------------------------------------------------
def cor_loss_pallas(embedding, *, cor_weight, channels, hidden_size):
    if cor_weight == 0:
        return jnp.float32(0.0)

    channel_size = hidden_size // channels
    emb = embedding.reshape(-1, hidden_size)             # native dtype, no host cast
    N = emb.shape[0]

    # chunk c == emb[:, c*cs:(c+1)*cs], laid out (channels, N, channel_size)
    chunks = jnp.transpose(emb.reshape(N, channels, channel_size), (1, 0, 2))

    # VMEM budget: resident centered-D scratch + per-step N^2 temporaries +
    # double-buffered input chunk + Mosaic headroom, capped below physical.
    d_all_bytes = channels * N * N * 4
    work_bytes = 4 * N * N * 4
    in_bytes = 2 * 2 * N * channel_size * emb.dtype.itemsize
    need = d_all_bytes + work_bytes + in_bytes + (2 << 20)
    cap = int(0.9 * _vmem_capacity_bytes())
    vmem_budget = max(min(need, cap), 8 << 20)

    out = pl.pallas_call(
        _cor_loss_kernel,
        out_shape=jax.ShapeDtypeStruct((1, 1), jnp.float32),
        grid_spec=pltpu.PrefetchScalarGridSpec(
            num_scalar_prefetch=0,
            grid=(channels,),
            in_specs=[pl.BlockSpec((1, N, channel_size), lambda c: (c, 0, 0))],
            out_specs=pl.BlockSpec((1, 1), lambda c: (0, 0)),
            scratch_shapes=[pltpu.VMEM((channels, N, N), jnp.float32),
                            pltpu.VMEM((channels, 1, 1), jnp.float32)]),
        compiler_params=pltpu.CompilerParams(
            dimension_semantics=("arbitrary",),
            vmem_limit_bytes=vmem_budget),
    )(chunks)

    b = (channels + 1.0) * channels / 2.0
    return jnp.float32(cor_weight) * out[0, 0] / jnp.float32(b)


# --------------------------------------------------------------------------
# Pure-JAX reference mirroring the PyTorch module, for validation.
# --------------------------------------------------------------------------
def cor_loss_reference(embedding, *, cor_weight, channels, hidden_size):
    if cor_weight == 0:
        return jnp.float32(0.0)
    emb = embedding.reshape(-1, hidden_size).astype(jnp.float32)
    chunks = jnp.split(emb, channels, axis=1)

    def centered(X):
        r = jnp.sum(X * X, axis=1, keepdims=True)
        D = jnp.sqrt(jnp.maximum(r - 2.0 * X @ X.T + r.T, 0.0) + 1e-8)
        return (D - jnp.mean(D, axis=0, keepdims=True)
                - jnp.mean(D, axis=1, keepdims=True) + jnp.mean(D))

    def dcov(A, B, n):
        return jnp.sqrt(jnp.maximum(jnp.sum(A * B) / (n * n), 0.0) + 1e-8)

    loss = jnp.float32(0.0)
    for i in range(channels):
        for j in range(i + 1, channels):
            x, y = chunks[i], chunks[j]
            n = jnp.float32(x.shape[0])
            D1, D2 = centered(x), centered(y)
            d12, d11, d22 = dcov(D1, D2, n), dcov(D1, D1, n), dcov(D2, D2, n)
            loss = loss + d12 / (jnp.sqrt(jnp.maximum(d11 * d22, 0.0)) + 1e-10)
    b = (channels + 1.0) * channels / 2.0
    return jnp.float32(cor_weight) * loss / jnp.float32(b)


if __name__ == "__main__":
    # Module config (synthetic, deterministic).
    cor_weight = 0.5
    channels = 4
    hidden_size = 32

    # Example embedding: (batch=2, seq=64, hidden=32) -> flattened N = 128 rows.
    key = jax.random.PRNGKey(0)
    embedding = jax.random.normal(key, (2, 64, hidden_size), dtype=jnp.float32)

    run = functools.partial(cor_loss_pallas,
                            cor_weight=cor_weight,
                            channels=channels,
                            hidden_size=hidden_size)

    out = jax.block_until_ready(run(embedding))
    ref = jax.block_until_ready(
        cor_loss_reference(embedding,
                           cor_weight=cor_weight,
                           channels=channels,
                           hidden_size=hidden_size))

    assert jnp.allclose(out, ref, rtol=5e-4, atol=1e-5), (out, ref)
    print("KERNEL_OK")
</pallas_src>

<mosaic_0001>
module attributes {stable_mosaic.version = 11 : i64} {
  func.func @_cor_loss_kernel(%arg0: i32, %arg1: memref<1x128x8xf32, #tpu.memory_space<vmem>>, %arg2: memref<1x1xf32, #tpu.memory_space<vmem>>, %arg3: memref<4x128x128xf32, #tpu.memory_space<vmem>>, %arg4: memref<4x1x1xf32, #tpu.memory_space<vmem>>) attributes {dimension_semantics = [#tpu.dimension_semantics<arbitrary>], iteration_bounds = array<i64: 4>, scalar_prefetch = 0 : i64, scratch_operands = 2 : i64, tpu.core_type = #tpu.core_type<tc>, window_params = [{transform_indices = @transform_0, window_bounds = array<i64: 1, 128, 8>}, {pipeline_mode = #tpu.pipeline_mode<synchronous>, transform_indices = @transform_1, window_bounds = array<i64: 1, 1>}]} {
    %c0_i32 = arith.constant 0 : i32
    %0 = arith.cmpi eq, %arg0, %c0_i32 : i32
    %1 = arith.extui %0 : i1 to i32
    %c0_i32_0 = arith.constant 0 : i32
    %2 = arith.cmpi ne, %1, %c0_i32_0 : i32
    scf.if %2 {
      %cst_28 = arith.constant 0.000000e+00 : f32
      %69 = vector.broadcast %cst_28 : f32 to vector<1x1xf32>
      %c0_29 = arith.constant 0 : index
      %c0_30 = arith.constant 0 : index
      %70 = vector.load %arg2[%c0_29, %c0_30] : memref<1x1xf32, #tpu.memory_space<vmem>>, vector<1x1xf32>
      tpu.vector_store %arg2[%c0_29, %c0_30], %69 {strides = array<i32>} : memref<1x1xf32, #tpu.memory_space<vmem>>, vector<1x1xf32>,
    } else {
    }
    %c0 = arith.constant 0 : index
    %c0_1 = arith.constant 0 : index
    %c0_2 = arith.constant 0 : index
    %3 = vector.load %arg1[%c0, %c0_1, %c0_2] : memref<1x128x8xf32, #tpu.memory_space<vmem>>, vector<1x128x8xf32>
    %4 = vector.shape_cast %3 : vector<1x128x8xf32> to vector<128x8xf32>
    %cst = arith.constant 1.000000e+00 : f32
    %cst_3 = arith.constant 1.280000e+02 : f32
    %5 = arith.divf %cst, %cst_3 : f32
    %6 = arith.mulf %5, %5 : f32
    %7 = arith.mulf %4, %4 : vector<128x8xf32>
    %cst_4 = arith.constant dense<0.000000e+00> : vector<128xf32>
    %8 = vector.multi_reduction <add>, %7, %cst_4 [1] : vector<128x8xf32> to vector<128xf32>
    %9 = vector.shape_cast %8 : vector<128xf32> to vector<128x1xf32>
    %cst_5 = arith.constant 1.000000e+00 : f32
    %10 = vector.broadcast %cst_5 : f32 to vector<1x8xf32>
    %cst_6 = arith.constant dense<0.000000e+00> : vector<1x128xf32>
    %11 = tpu.matmul %10, %7, %cst_6 {dimension_numbers = #tpu.dot_dimension_numbers<[1], [1], [0], [0], [0, 0, 1, 0], [], []>} : vector<1x8xf32>, vector<128x8xf32>, vector<1x128xf32> -> vector<1x128xf32>
    %cst_7 = arith.constant dense<0.000000e+00> : vector<128x128xf32>
    %12 = tpu.matmul %4, %4, %cst_7 {dimension_numbers = #tpu.dot_dimension_numbers<[1], [1], [0], [0], [0, 0, 1, 0], [], []>} : vector<128x8xf32>, vector<128x8xf32>, vector<128x128xf32> -> vector<128x128xf32>
    %cst_8 = arith.constant 2.000000e+00 : f32
    %13 = vector.broadcast %cst_8 : f32 to vector<128x128xf32>
    %14 = arith.mulf %13, %12 : vector<128x128xf32>
    %15 = vector.broadcast %9 : vector<128x1xf32> to vector<128x128xf32>
    %16 = arith.subf %15, %14 : vector<128x128xf32>
    %17 = vector.broadcast %11 : vector<1x128xf32> to vector<128x128xf32>
    %18 = arith.addf %16, %17 : vector<128x128xf32>
    %cst_9 = arith.constant 0.000000e+00 : f32
    %19 = vector.broadcast %cst_9 : f32 to vector<128x128xf32>
    %20 = arith.maximumf %18, %19 : vector<128x128xf32>
    %cst_10 = arith.constant 9.99999993E-9 : f32
    %21 = vector.broadcast %cst_10 : f32 to vector<128x128xf32>
    %22 = arith.addf %20, %21 : vector<128x128xf32>
    %23 = math.sqrt %22 : vector<128x128xf32>
    %cst_11 = arith.constant dense<0.000000e+00> : vector<128xf32>
    %24 = vector.multi_reduction <add>, %23, %cst_11 [1] : vector<128x128xf32> to vector<128xf32>
    %25 = vector.shape_cast %24 : vector<128xf32> to vector<128x1xf32>
    %cst_12 = arith.constant dense<0.000000e+00> : vector<128xf32>
    %26 = vector.multi_reduction <add>, %23, %cst_12 [0] : vector<128x128xf32> to vector<128xf32>
    %27 = vector.shape_cast %26 : vector<128xf32> to vector<1x128xf32>
    %cst_13 = arith.constant dense<0.000000e+00> : vector<1xf32>
    %28 = vector.multi_reduction <add>, %25, %cst_13 [0] : vector<128x1xf32> to vector<1xf32>
    %29 = vector.shape_cast %28 : vector<1xf32> to vector<1x1xf32>
    %30 = vector.broadcast %5 : f32 to vector<1x128xf32>
    %31 = arith.mulf %27, %30 : vector<1x128xf32>
    %32 = vector.broadcast %31 : vector<1x128xf32> to vector<128x128xf32>
    %33 = arith.subf %23, %32 : vector<128x128xf32>
    %34 = vector.broadcast %5 : f32 to vector<128x1xf32>
    %35 = arith.mulf %25, %34 : vector<128x1xf32>
    %36 = vector.broadcast %35 : vector<128x1xf32> to vector<128x128xf32>
    %37 = arith.subf %33, %36 : vector<128x128xf32>
    %38 = vector.broadcast %6 : f32 to vector<1x1xf32>
    %39 = arith.mulf %29, %38 : vector<1x1xf32>
    %40 = vector.broadcast %39 : vector<1x1xf32> to vector<128x128xf32>
    %41 = arith.addf %37, %40 : vector<128x128xf32>
    %42 = arith.index_cast %arg0 : i32 to index
    %c0_14 = arith.constant 0 : index
    %c0_15 = arith.constant 0 : index
    %43 = vector.load %arg3[%42, %c0_14, %c0_15] : memref<4x128x128xf32, #tpu.memory_space<vmem>>, vector<1x128x128xf32>
    %44 = vector.shape_cast %43 : vector<1x128x128xf32> to vector<128x128xf32>
    %45 = vector.shape_cast %41 : vector<128x128xf32> to vector<1x128x128xf32>
    tpu.vector_store %arg3[%42, %c0_14, %c0_15], %45 {strides = array<i32>} : memref<4x128x128xf32, #tpu.memory_space<vmem>>, vector<1x128x128xf32>,
    %46 = arith.mulf %41, %41 : vector<128x128xf32>
    %cst_16 = arith.constant dense<0.000000e+00> : vector<128xf32>
    %47 = vector.multi_reduction <add>, %46, %cst_16 [1] : vector<128x128xf32> to vector<128xf32>
    %48 = vector.shape_cast %47 : vector<128xf32> to vector<128x1xf32>
    %cst_17 = arith.constant dense<0.000000e+00> : vector<1xf32>
    %49 = vector.multi_reduction <add>, %48, %cst_17 [0] : vector<128x1xf32> to vector<1xf32>
    %50 = vector.shape_cast %49 : vector<1xf32> to vector<1x1xf32>
    %51 = vector.broadcast %6 : f32 to vector<1x1xf32>
    %52 = arith.mulf %50, %51 : vector<1x1xf32>
    %cst_18 = arith.constant 0.000000e+00 : f32
    %53 = vector.broadcast %cst_18 : f32 to vector<1x1xf32>
    %54 = arith.maximumf %52, %53 : vector<1x1xf32>
    %cst_19 = arith.constant 9.99999993E-9 : f32
    %55 = vector.broadcast %cst_19 : f32 to vector<1x1xf32>
    %56 = arith.addf %54, %55 : vector<1x1xf32>
    %57 = math.sqrt %56 : vector<1x1xf32>
    %58 = arith.index_cast %arg0 : i32 to index
    %c0_20 = arith.constant 0 : index
    %c0_21 = arith.constant 0 : index
    %59 = vector.load %arg4[%58, %c0_20, %c0_21] : memref<4x1x1xf32, #tpu.memory_space<vmem>>, vector<1x1x1xf32>
    %60 = vector.shape_cast %59 : vector<1x1x1xf32> to vector<1x1xf32>
    %61 = vector.shape_cast %57 : vector<1x1xf32> to vector<1x1x1xf32>
    tpu.vector_store %arg4[%58, %c0_20, %c0_21], %61 {strides = array<i32>} : memref<4x1x1xf32, #tpu.memory_space<vmem>>, vector<1x1x1xf32>,
    %cst_22 = arith.constant 0.000000e+00 : f32
    %62 = vector.broadcast %cst_22 : f32 to vector<1x1xf32>
    %c0_i32_23 = arith.constant 0 : i32
    %63 = arith.subi %arg0, %c0_i32_23 : i32
    %64 = arith.addi %c0_i32_23, %63 : i32
    %c1_i32 = arith.constant 1 : i32
    %65 = scf.for %arg5 = %c0_i32_23 to %64 step %c1_i32 iter_args(%arg6 = %62) -> (vector<1x1xf32>)  : i32 {
      %69 = arith.index_cast %arg5 : i32 to index
      %c0_28 = arith.constant 0 : index
      %c0_29 = arith.constant 0 : index
      %70 = vector.load %arg3[%69, %c0_28, %c0_29] : memref<4x128x128xf32, #tpu.memory_space<vmem>>, vector<1x128x128xf32>
      %71 = vector.shape_cast %70 : vector<1x128x128xf32> to vector<128x128xf32>
      %72 = arith.mulf %41, %71 : vector<128x128xf32>
      %cst_30 = arith.constant dense<0.000000e+00> : vector<128xf32>
      %73 = vector.multi_reduction <add>, %72, %cst_30 [1] : vector<128x128xf32> to vector<128xf32>
      %74 = vector.shape_cast %73 : vector<128xf32> to vector<128x1xf32>
      %cst_31 = arith.constant dense<0.000000e+00> : vector<1xf32>
      %75 = vector.multi_reduction <add>, %74, %cst_31 [0] : vector<128x1xf32> to vector<1xf32>
      %76 = vector.shape_cast %75 : vector<1xf32> to vector<1x1xf32>
      %77 = vector.broadcast %6 : f32 to vector<1x1xf32>
      %78 = arith.mulf %76, %77 : vector<1x1xf32>
      %cst_32 = arith.constant 0.000000e+00 : f32
      %79 = vector.broadcast %cst_32 : f32 to vector<1x1xf32>
      %80 = arith.maximumf %78, %79 : vector<1x1xf32>
      %cst_33 = arith.constant 9.99999993E-9 : f32
      %81 = vector.broadcast %cst_33 : f32 to vector<1x1xf32>
      %82 = arith.addf %80, %81 : vector<1x1xf32>
      %83 = math.sqrt %82 : vector<1x1xf32>
      %84 = arith.index_cast %arg5 : i32 to index
      %c0_34 = arith.constant 0 : index
      %c0_35 = arith.constant 0 : index
      %85 = vector.load %arg4[%84, %c0_34, %c0_35] : memref<4x1x1xf32, #tpu.memory_space<vmem>>, vector<1x1x1xf32>
      %86 = vector.shape_cast %85 : vector<1x1x1xf32> to vector<1x1xf32>
      %87 = arith.mulf %57, %86 : vector<1x1xf32>
      %cst_36 = arith.constant 0.000000e+00 : f32
      %88 = vector.broadcast %cst_36 : f32 to vector<1x1xf32>
      %89 = arith.maximumf %87, %88 : vector<1x1xf32>
      %90 = math.sqrt %89 : vector<1x1xf32>
      %cst_37 = arith.constant 1.000000e-10 : f32
      %91 = vector.broadcast %cst_37 : f32 to vector<1x1xf32>
      %92 = arith.addf %90, %91 : vector<1x1xf32>
      %93 = arith.divf %83, %92 : vector<1x1xf32>
      %94 = arith.addf %arg6, %93 : vector<1x1xf32>
      scf.yield %94 : vector<1x1xf32>
    }
    %c0_24 = arith.constant 0 : index
    %c0_25 = arith.constant 0 : index
    %66 = vector.load %arg2[%c0_24, %c0_25] : memref<1x1xf32, #tpu.memory_space<vmem>>, vector<1x1xf32>
    %67 = arith.addf %66, %65 : vector<1x1xf32>
    %c0_26 = arith.constant 0 : index
    %c0_27 = arith.constant 0 : index
    %68 = vector.load %arg2[%c0_26, %c0_27] : memref<1x1xf32, #tpu.memory_space<vmem>>, vector<1x1xf32>
    tpu.vector_store %arg2[%c0_26, %c0_27], %67 {strides = array<i32>} : memref<1x1xf32, #tpu.memory_space<vmem>>, vector<1x1xf32>,
    return
  }
  func.func @transform_0(%arg0: i32) -> (i32, i32, i32) {
    %c0_i32 = arith.constant 0 : i32
    %c0_i32_0 = arith.constant 0 : i32
    %c0_i32_1 = arith.constant 0 : i32
    return %arg0, %c0_i32, %c0_i32_0 : i32, i32, i32
  }
  func.func @transform_1(%arg0: i32) -> (i32, i32) {
    %c0_i32 = arith.constant 0 : i32
    %c0_i32_0 = arith.constant 0 : i32
    %c0_i32_1 = arith.constant 0 : i32
    return %c0_i32, %c0_i32_0 : i32, i32
  }
}

</mosaic_0001>

<bundles_post_ra>
// kernel: tpu_custom_call.1
= control target key start
LH: loop header
LB: loop body
LE: loop exit
PB: predicated region body
PF: predicated region fallthrough
CT: control target
= control target key end

     0   :  { %6 = vsyncpa [#allocation5], 0  ;;  %s1488_s6 = smov 0   ;;  %s2247_s0 = inlined_call_operand.vmem [shape: f32[4,128,8], index: 0, kind: input, shape index: {}]   ;;  %s2248_s1 = inlined_call_operand.hbm [shape: f32[1,1], index: 1, kind: output, shape index: {}]  }
   0x1 LB: > { %s1494_s7 = sadd.s32 4294967295, %s1459_s6   ;;  %p1125_p0 = scmp.ge.s32.totalorder %s1459_s6, 1  ;;  %s1459_s6 = sphi %s1488_s6, %s12_s6  }
   0x2   : > { %p83_p1 = scmp.lt.s32.totalorder %s1459_s6, 5 }
   0x4   : > { %p84_p2 = pnand %p1125_p0, %p83_p1 }
   0x5   : > { %p98_p3 = scmp.lt.s32.totalorder (!%p84_p2), %s1494_s7, 3  ;;  %p1128_p4 = scmp.ne.s32.totalorder (!%p84_p2), %s1494_s7, 0 }
   0x6   : > { %87 = sbr.rel (%p84_p2) target bundleno = 943 (0x3af), region = 24 }
   0xb   : > { %s99_s8 = scalar_select %p98_p3, %s1494_s7, 3 }
   0xc   : > { %106 = sbr.rel (%p1128_p4) target bundleno = 19 (0x13), region = 28 }
   0xd   : > { %s1186_s9 = sshll.u32 %s99_s8, 7 }
   0xe   : > { %s1503_s12 = scalar_lea.vmem %s2247_s0, %s1186_s9 }
  0x11   : > { %vm107_vm0 = vcmask 0   ;;  %v1473_v0 = vmov 0.0  }
  0x12   : > { %108 = vst.msk [vmem:[#allocation4] sm:$0x1] %vm107_vm0, %v1473_v0 }
  0x13 PF: > { %v1507_v1 = vld [vmem:[%s1503_s12 + $0x78] sm:$0xff]  ;;  %vm141_vm1 = vcmask 64512   ;;  %v1510_v2 = vld [vmem:[%s1503_s12 + $0x70] sm:$0xff]  ;;  %v1474_v3 = vmov 0.0   ;;  %vm1475_vm2 = vmmov 0   ;;  %v1532_v6 = vld [vmem:[%s1503_s12 + $0x68] sm:$0xff]  ;;  %v536_v52 = vlaneseq }
  0x14   : > { %1274 = vmatprep.subr.msk.mxu1 %vm141_vm1, %v1507_v1  ;;  %1239 = vmatprep.subr.mxu0 %v1474_v3  ;;  %v1517_v4 = vmul.f32 %v1507_v1, %v1507_v1  ;;  %v1528_v5 = vmul.f32 %v1510_v2, %v1510_v2  ;;  %v1535_v7 = vld [vmem:[%s1503_s12 + $0x18] sm:$0xff]  ;;  %v1538_v8 = vld [vmem:[%s1503_s12 + $0x10] sm:$0xff]  ;;  %v1545_v10 = vld [vmem:[%s1503_s12 + $0x8] sm:$0xff]  ;;  %v1564_v13 = vmul.f32 %v1532_v6, %v1532_v6  ;;  %v1476_v50 = vmov 1.0   ;;  %s1178_s13 = sshll.u32 %s1494_s7, 7  ;;  %s1187_s15 = scalar_lea.vmem [#allocation3], %s1459_s6 }
  0x15   : > { %1275 = vmatpush3.xpose.msk.msra.mxu1 %vm141_vm1, %v1507_v1  ;;  %1271 = vmatprep.mubr.msk.f32.mxu0 %vm1475_vm2, %v1474_v3  ;;  %v1542_v9 = vmul.f32 %v1538_v8, %v1538_v8  ;;  %v1548_v11 = vld [vmem:[%s1503_s12] sm:$0xff]  ;;  %v1568_v14 = vmul.f32 %v1535_v7, %v1535_v7  ;;  %v1577_v17 = vld [vmem:[%s1503_s12 + $0x28] sm:$0xff]  ;;  %v1581_v18 = vmul.f32 %v1545_v10, %v1545_v10  ;;  %v1606_v25 = vld [vmem:[%s1503_s12 + $0x58] sm:$0xff]  ;;  %v537_v55 = vshrl.u32 %v536_v52, 7  ;;  %s2074_s14 = scalar_lea.vmem [#allocation2], %s1178_s13  ;;  %p1180_p5 = scmp.le.s32.totalorder %s1494_s7, 0 }
  0x16   : > { %1240 = vmatpush3.xpose.msk.msra.mxu0 %vm141_vm1, %v1517_v4  ;;  %1276 = vmatprep.subr.msk.mxu1 %vm141_vm1, %v1510_v2  ;;  %v1554_v12 = vmul.f32 %v1548_v11, %v1548_v11  ;;  %v1574_v16 = vld [vmem:[%s1503_s12 + $0x60] sm:$0xff]  ;;  %v1602_v24 = vmul.f32 %v1577_v17, %v1577_v17  ;;  %v1609_v26 = vld [vmem:[%s1503_s12 + $0x38] sm:$0xff]  ;;  %v1616_v28 = vld [vmem:[%s1503_s12 + $0x30] sm:$0xff]  ;;  %v136_v31 = vmul.f32 %v1606_v25, %v1606_v25  ;;  %v181_v46 = vsel %vm141_vm1, %v1564_v13, 0.0  ;;  %s2176_s16 = smov (!%p1180_p5), 0  }
  0x17   : > { %1241 = vmatprep.subr.mxu0 %v1474_v3  ;;  %1306 = vmatprep.mubr.msk.f32.mxu1 %vm141_vm1, %v1548_v11  ;;  %v148_v15 = vsel %vm141_vm1, %v1542_v9, 0.0  ;;  %v1586_v20 = vld [vmem:[%s1503_s12 + $0x20] sm:$0xff]  ;;  %v151_v21 = vsel %vm141_vm1, %v1568_v14, 0.0  ;;  %v145_v22 = vsel %vm141_vm1, %v1581_v18, 0.0  ;;  %v137_v23 = vmul.f32 %v1574_v16, %v1574_v16  ;;  %v1633_v33 = vld [vmem:[%s1503_s12 + $0x50] sm:$0xff]  ;;  %v1636_v34 = vld [vmem:[%s1503_s12 + $0x48] sm:$0xff] }
  0x18   : > { %v142_v19 = vsel %vm141_vm1, %v1554_v12, 0.0  ;;  %149 = vadd.xlane.f32.xlu1 %v148_v15  ;;  %v1613_v27 = vmul.f32 %v1586_v20, %v1586_v20  ;;  %v157_v29 = vsel %vm141_vm1, %v1602_v24, 0.0  ;;  %v132_v32 = vmul.f32 %v1609_v26, %v1609_v26  ;;  %v1641_v36 = vld [vmem:[%s1503_s12 + $0x40] sm:$0xff] }
  0x19   : > { %1277 = vmatpush3.xpose.msk.msra.mxu1 %vm141_vm1, %v1510_v2  ;;  %143 = vadd.xlane.f32.xlu0 %v142_v19  ;;  %v131_v35 = vmul.f32 %v1616_v28, %v1616_v28  ;;  %v135_v39 = vmul.f32 %v1633_v33, %v1633_v33  ;;  %v134_v40 = vmul.f32 %v1636_v34, %v1636_v34  ;;  %v175_v44 = vsel %vm141_vm1, %v136_v31, 0.0 }
  0x1a   : > { %1242 = vmatpush3.xpose.msk.msra.mxu0 %vm141_vm1, %v1528_v5  ;;  %1278 = vmatprep.subr.msk.mxu1 %vm141_vm1, %v1532_v6  ;;  %v154_v30 = vsel %vm141_vm1, %v1613_v27, 0.0  ;;  %v163_v37 = vsel %vm141_vm1, %v132_v32, 0.0  ;;  %v133_v41 = vmul.f32 %v1641_v36, %v1641_v36  ;;  %v178_v47 = vsel %vm141_vm1, %v137_v23, 0.0 }
  0x1b   : > { %1243 = vmatprep.subr.mxu0 %v1474_v3  ;;  %v160_v38 = vsel %vm141_vm1, %v131_v35, 0.0  ;;  %v169_v42 = vsel %vm141_vm1, %v134_v40, 0.0  ;;  %v172_v45 = vsel %vm141_vm1, %v135_v39, 0.0  ;;  %v187_v48 = vsel %vm141_vm1, %v1517_v4, 0.0 }
  0x1c   : > { %152 = vadd.xlane.f32.xlu1 %v151_v21  ;;  %v166_v43 = vsel %vm141_vm1, %v133_v41, 0.0  ;;  %v184_v49 = vsel %vm141_vm1, %v1528_v5, 0.0  ;;  %v538_v57 = vsub.s32 0, %v537_v55 }
  0x1d   : > { %1279 = vmatpush3.xpose.msk.msra.mxu1 %vm141_vm1, %v1532_v6  ;;  %146 = vadd.xlane.f32.xlu0 %v145_v22 }
  0x1e   : > { %1244 = vmatpush3.xpose.msk.msra.mxu0 %vm141_vm1, %v1564_v13  ;;  %1280 = vmatprep.subr.msk.mxu1 %vm141_vm1, %v1574_v16 }
  0x1f   : > { %1245 = vmatprep.subr.mxu0 %v1474_v3 }
  0x20   : > { %158 = vadd.xlane.f32.xlu1 %v157_v29 }
  0x21   : > { %1281 = vmatpush3.xpose.msk.msra.mxu1 %vm141_vm1, %v1574_v16  ;;  %155 = vadd.xlane.f32.xlu0 %v154_v30 }
  0x22   : > { %1246 = vmatpush3.xpose.msk.msra.mxu0 %vm141_vm1, %v137_v23  ;;  %1282 = vmatprep.subr.msk.mxu1 %vm141_vm1, %v1606_v25 }
  0x23   : > { %1247 = vmatprep.subr.mxu0 %v1474_v3 }
  0x24   : > { %164 = vadd.xlane.f32.xlu1 %v163_v37 }
  0x25   : > { %1283 = vmatpush3.xpose.msk.msra.mxu1 %vm141_vm1, %v1606_v25  ;;  %161 = vadd.xlane.f32.xlu0 %v160_v38 }
  0x26   : > { %1248 = vmatpush3.xpose.msk.msra.mxu0 %vm141_vm1, %v136_v31  ;;  %1284 = vmatprep.subr.msk.mxu1 %vm141_vm1, %v1633_v33 }
  0x27   : > { %1249 = vmatprep.subr.mxu0 %v1474_v3 }
  0x28   : > { %170 = vadd.xlane.f32.xlu1 %v169_v42 }
  0x29   : > { %1285 = vmatpush3.xpose.msk.msra.mxu1 %vm141_vm1, %v1633_v33  ;;  %167 = vadd.xlane.f32.xlu0 %v166_v43 }
  0x2a   : > { %1250 = vmatpush3.xpose.msk.msra.mxu0 %vm141_vm1, %v135_v39  ;;  %1286 = vmatprep.subr.msk.mxu1 %vm141_vm1, %v1636_v34 }
  0x2b   : > { %1251 = vmatprep.subr.mxu0 %v1474_v3 }
  0x2c   : > { %176 = vadd.xlane.f32.xlu1 %v175_v44 }
  0x2d   : > { %1287 = vmatpush3.xpose.msk.msra.mxu1 %vm141_vm1, %v1636_v34  ;;  %173 = vadd.xlane.f32.xlu0 %v172_v45 }
  0x2e   : > { %1252 = vmatpush3.xpose.msk.msra.mxu0 %vm141_vm1, %v134_v40  ;;  %1288 = vmatprep.subr.msk.mxu1 %vm141_vm1, %v1641_v36 }
  0x2f   : > { %1253 = vmatprep.subr.mxu0 %v1474_v3 }
  0x30   : > { %182 = vadd.xlane.f32.xlu1 %v181_v46 }
  0x31   : > { %1289 = vmatpush3.xpose.msk.msra.mxu1 %vm141_vm1, %v1641_v36  ;;  %179 = vadd.xlane.f32.xlu0 %v178_v47 }
  0x32   : > { %1254 = vmatpush3.xpose.msk.msra.mxu0 %vm141_vm1, %v133_v41  ;;  %1290 = vmatprep.subr.msk.mxu1 %vm141_vm1, %v1609_v26 }
  0x33   : > { %1255 = vmatprep.subr.mxu0 %v1474_v3 }
  0x34   : > { %188 = vadd.xlane.f32.xlu1 %v187_v48 }
  0x35   : > { %1291 = vmatpush3.xpose.msk.msra.mxu1 %vm141_vm1, %v1609_v26  ;;  %185 = vadd.xlane.f32.xlu0 %v184_v49 }
  0x36   : > { %1256 = vmatpush3.xpose.msk.msra.mxu0 %vm141_vm1, %v132_v32  ;;  %1292 = vmatprep.subr.msk.mxu1 %vm141_vm1, %v1616_v28 }
  0x37   : > { %1257 = vmatprep.subr.mxu0 %v1474_v3 }
  0x39   : > { %1293 = vmatpush3.xpose.msk.msra.mxu1 %vm141_vm1, %v1616_v28 }
  0x3a   : > { %1258 = vmatpush3.xpose.msk.msra.mxu0 %vm141_vm1, %v131_v35  ;;  %1294 = vmatprep.subr.msk.mxu1 %vm141_vm1, %v1577_v17 }
  0x3b   : > { %1259 = vmatprep.subr.mxu0 %v1474_v3 }
  0x3d   : > { %1295 = vmatpush3.xpose.msk.msra.mxu1 %vm141_vm1, %v1577_v17 }
  0x3e   : > { %1260 = vmatpush3.xpose.msk.msra.mxu0 %vm141_vm1, %v1602_v24  ;;  %1296 = vmatprep.subr.msk.mxu1 %vm141_vm1, %v1586_v20 }
  0x3f   : > { %1261 = vmatprep.subr.mxu0 %v1474_v3 }
  0x41   : > { %1297 = vmatpush3.xpose.msk.msra.mxu1 %vm141_vm1, %v1586_v20 }
  0x42   : > { %1262 = vmatpush3.xpose.msk.msra.mxu0 %vm141_vm1, %v1613_v27  ;;  %1298 = vmatprep.subr.msk.mxu1 %vm141_vm1, %v1535_v7 }
  0x43   : > { %1263 = vmatprep.subr.mxu0 %v1474_v3 }
  0x45   : > { %1299 = vmatpush3.xpose.msk.msra.mxu1 %vm141_vm1, %v1535_v7 }
  0x46   : > { %1264 = vmatpush3.xpose.msk.msra.mxu0 %vm141_vm1, %v1568_v14  ;;  %1300 = vmatprep.subr.msk.mxu1 %vm141_vm1, %v1538_v8 }
  0x47   : > { %1265 = vmatprep.subr.mxu0 %v1474_v3 }
  0x49   : > { %1301 = vmatpush3.xpose.msk.msra.mxu1 %vm141_vm1, %v1538_v8 }
  0x4a   : > { %1266 = vmatpush3.xpose.msk.msra.mxu0 %vm141_vm1, %v1542_v9  ;;  %1302 = vmatprep.subr.msk.mxu1 %vm141_vm1, %v1545_v10 }
  0x4b   : > { %1267 = vmatprep.subr.mxu0 %v1474_v3 }
  0x4d   : > { %1303 = vmatpush3.xpose.msk.msra.mxu1 %vm141_vm1, %v1545_v10 }
  0x4e   : > { %1268 = vmatpush3.xpose.msk.msra.mxu0 %vm141_vm1, %v1581_v18  ;;  %1304 = vmatprep.subr.msk.mxu1 %vm141_vm1, %v1548_v11 }
  0x4f   : > { %1269 = vmatprep.subr.mxu0 %v1474_v3 }
  0x51   : > { %1305 = vmatpush3.xpose.msk.msra.mxu1 %vm141_vm1, %v1548_v11 }
  0x52   : > { %1270 = vmatpush3.xpose.msk.msra.mxu0 %vm141_vm1, %v1554_v12 }
  0x54   : > { %1307 = vmatmul.mubr.msk.f32.vlgmr.msra.gmra.mxu1 %vm141_vm1, %v1545_v10 }
  0x55   : > { %1272 = vmatmul.mubr.msk.f32.vlgmr.msra.gmra.mxu0 %vm141_vm1, %v1476_v50  ;;  %1309 = vmatprep.mubr.msk.f32.mxu1 %vm141_vm1, %v1538_v8 }
  0x58   : > { %1310 = vmatmul.mubr.msk.f32.gmra.mxu1 %vm141_vm1, %v1535_v7 }
  0x59   : > { %1312 = vmatprep.mubr.msk.f32.mxu1 %vm141_vm1, %v1586_v20 }
  0x5c   : > { %1313 = vmatmul.mubr.msk.f32.gmra.mxu1 %vm141_vm1, %v1577_v17 }
  0x5d   : > { %1315 = vmatprep.mubr.msk.f32.mxu1 %vm141_vm1, %v1616_v28 }
  0x60   : > { %1316 = vmatmul.mubr.msk.f32.gmra.mxu1 %vm141_vm1, %v1609_v26 }
  0x61   : > { %1318 = vmatprep.mubr.msk.f32.mxu1 %vm141_vm1, %v1641_v36 }
  0x64   : > { %1319 = vmatmul.mubr.msk.f32.gmra.mxu1 %vm141_vm1, %v1636_v34 }
  0x65   : > { %1321 = vmatprep.mubr.msk.f32.mxu1 %vm141_vm1, %v1633_v33 }
  0x68   : > { %1322 = vmatmul.mubr.msk.f32.gmra.mxu1 %vm141_vm1, %v1606_v25 }
  0x69   : > { %1324 = vmatprep.mubr.msk.f32.mxu1 %vm141_vm1, %v1574_v16 }
  0x6c   : > { %1325 = vmatmul.mubr.msk.f32.gmra.mxu1 %vm141_vm1, %v1532_v6 }
  0x6d   : > { %1327 = vmatprep.mubr.msk.f32.mxu1 %vm141_vm1, %v1510_v2 }
  0x70   : > { %1328 = vmatmul.mubr.msk.f32.gmra.mxu1 %vm141_vm1, %v1507_v1 }
  0xa1   : > { %v150_v51 = vpop.xlane.xlu1 %149 }
  0xa2   : > { %v144_v53 = vpop.xlane.xlu0 %143 }
  0xa5   : > { %v153_v54 = vpop.xlane.xlu1 %152 }
  0xa6   : > { %v147_v56 = vpop.xlane.xlu0 %146 }
  0xa9   : > { %v159_v58 = vpop.xlane.xlu1 %158 }
  0xaa   : > { %v156_v62 = vpop.xlane.xlu0 %155 }
  0xad   : > { %v165_v1 = vpop.xlane.xlu1 %164 }
  0xae   : > { %v162_v14 = vpop.xlane.xlu0 %161 }
  0xb1   : > { %v171_v22 = vpop.xlane.xlu1 %170 }
  0xb2   : > { %v168_v31 = vpop.xlane.xlu0 %167 }
  0xb5   : > { %v177_v41 = vpop.xlane.xlu1 %176 }
  0xb6   : > { %v174_v52 = vpop.xlane.xlu0 %173 }
 0x114   : > { %v1308_v59 = vpop.f32.mrf.mxu1 }
 0x115   : > { %v505_v60 = vmul.f32 2.0, %v1308_v59  ;;  %v307_v61 = vpop.f32.mrf.mxu0 }
 0x116   : > { %v1768_v63 = vrot.slane %v307_v61, %v538_v57  ;;  %v425_v0 = vpop.f32.mrf.mxu1 }
 0x117   : > { %v504_v3 = vmul.f32 2.0, %v425_v0  ;;  %v521_v2 = vsub.f32 %v147_v56, %v505_v60  ;;  %v1273_v4 = vpop.f32.mrf.mxu0  ;;  %v183_v0 = vpop.xlane.xlu1 %182 }
 0x118   : > { %v1311_v5 = vpop.f32.mrf.mxu1 }
 0x119   : > { %v520_v6 = vsub.f32 %v144_v53, %v504_v3  ;;  %v541_v7 = vadd.f32 %v1768_v63, %v521_v2  ;;  %v507_v8 = vmul.f32 2.0, %v1311_v5 }
 0x11a   : > { %v435_v9 = vpop.f32.mrf.mxu1 }
 0x11b   : > { %v540_v10 = vadd.f32 %v1768_v63, %v520_v6  ;;  %v557_v11 = vmax.f32 %v541_v7, 0.0  ;;  %v523_v12 = vsub.f32 %v153_v54, %v507_v8  ;;  %v506_v13 = vmul.f32 2.0, %v435_v9 }
 0x11c   : > { %v1314_v15 = vpop.f32.mrf.mxu1 }
 0x11d   : > { %v556_v16 = vmax.f32 %v540_v10, 0.0  ;;  %v1772_v17 = vadd.f32 1e-08, %v557_v11  ;;  %v543_v18 = vadd.f32 %v1768_v63, %v523_v12  ;;  %v522_v19 = vsub.f32 %v150_v51, %v506_v13  ;;  %v180_v13 = vpop.xlane.xlu0 %179 }
 0x11e   : > { %v509_v20 = vmul.f32 2.0, %v1314_v15  ;;  %v445_v21 = vpop.f32.mrf.mxu1 }
 0x11f   : > { %v1775_v23 = vadd.f32 1e-08, %v556_v16  ;;  %1373 = vrsqrt.f32 %v1772_v17  ;;  %v559_v24 = vmax.f32 %v543_v18, 0.0  ;;  %v542_v25 = vadd.f32 %v1768_v63, %v522_v19 }
 0x120   : > { %v525_v26 = vsub.f32 %v159_v58, %v509_v20  ;;  %v508_v27 = vmul.f32 2.0, %v445_v21  ;;  %v1317_v28 = vpop.f32.mrf.mxu1  ;;  %vm597_vm3 = vcmp.eq.f32.partialorder %v1772_v17, inf  ;;  %v600_v56 = vand.u32 2147483648, %v1772_v17 }
 0x121   : > { %v1779_v29 = vadd.f32 1e-08, %v559_v24  ;;  %v511_v30 = vmul.f32 2.0, %v1317_v28  ;;  %1375 = vrsqrt.f32 %v1775_v23  ;;  %v558_v37 = vmax.f32 %v542_v25, 0.0 }
 0x122   : > { %v545_v32 = vadd.f32 %v1768_v63, %v525_v26  ;;  %v524_v33 = vsub.f32 %v156_v62, %v508_v27  ;;  %v455_v34 = vpop.f32.mrf.mxu1  ;;  %vm599_vm4 = vcmp.eq.f32.partialorder %v1772_v17, 0.0  ;;  %vm590_vm5 = vcmp.eq.f32.partialorder %v1775_v23, inf }
 0x123   : > { %v527_v35 = vsub.f32 %v165_v1, %v511_v30  ;;  %v510_v36 = vmul.f32 2.0, %v455_v34  ;;  %1377 = vrsqrt.f32 %v1779_v29  ;;  %v1790_v53 = vadd.f32 1e-08, %v558_v37  ;;  %v189_v30 = vpop.xlane.xlu1 %188 }
 0x124   : > { %v561_v38 = vmax.f32 %v545_v32, 0.0  ;;  %v544_v39 = vadd.f32 %v1768_v63, %v524_v33  ;;  %v1320_v40 = vpop.f32.mrf.mxu1  ;;  %v593_v3 = vand.u32 2147483648, %v1775_v23  ;;  %vm592_vm6 = vcmp.eq.f32.partialorder %v1775_v23, 0.0 }
 0x125   : > { %v547_v42 = vadd.f32 %v1768_v63, %v527_v35  ;;  %v513_v43 = vmul.f32 2.0, %v1320_v40  ;;  %v526_v44 = vsub.f32 %v162_v14, %v510_v36  ;;  %v614_v9 = vand.u32 2147483648, %v1779_v29 }
 0x126   : > { %v1786_v45 = vadd.f32 1e-08, %v561_v38  ;;  %v560_v46 = vmax.f32 %v544_v39, 0.0  ;;  %v465_v47 = vpop.f32.mrf.mxu1  ;;  %vm611_vm7 = vcmp.eq.f32.partialorder %v1779_v29, inf  ;;  %vm613_vm8 = vcmp.eq.f32.partialorder %v1779_v29, 0.0 }
 0x127   : > { %v563_v48 = vmax.f32 %v547_v42, 0.0  ;;  %v546_v49 = vadd.f32 %v1768_v63, %v526_v44  ;;  %v529_v50 = vsub.f32 %v171_v22, %v513_v43  ;;  %v512_v51 = vmul.f32 2.0, %v465_v47  ;;  %v186_v44 = vpop.xlane.xlu0 %185 }
 0x128   : > { %1379 = vrsqrt.f32 %v1786_v45  ;;  %v1793_v54 = vadd.f32 1e-08, %v560_v46  ;;  %v1323_v55 = vpop.f32.mrf.mxu1  ;;  %v628_v19 = vand.u32 2147483648, %v1786_v45  ;;  %vm625_vm9 = vcmp.eq.f32.partialorder %v1786_v45, inf }
 0x129   : > { %v1796_v57 = vadd.f32 1e-08, %v563_v48  ;;  %v562_v58 = vmax.f32 %v546_v49, 0.0  ;;  %v549_v59 = vadd.f32 %v1768_v63, %v529_v50  ;;  %v515_v60 = vmul.f32 2.0, %v1323_v55 }
 0x12a   : > { %1381 = vrsqrt.f32 %v1793_v54  ;;  %v528_v61 = vsub.f32 %v168_v31, %v512_v51  ;;  %v475_v62 = vpop.f32.mrf.mxu1  ;;  %vm604_vm10 = vcmp.eq.f32.partialorder %v1790_v53, inf  ;;  %vm606_vm11 = vcmp.eq.f32.partialorder %v1790_v53, 0.0 }
 0x12b   : > { %1383 = vrsqrt.f32 %v1796_v57  ;;  %v1804_v2 = vadd.f32 1e-08, %v562_v58  ;;  %v565_v4 = vmax.f32 %v549_v59, 0.0  ;;  %v531_v5 = vsub.f32 %v177_v41, %v515_v60 }
 0x12c   : > { %v1374_v1 = vpop.eup %1373  ;;  %v548_v6 = vadd.f32 %v1768_v63, %v528_v61  ;;  %v514_v7 = vmul.f32 2.0, %v475_v62  ;;  %v1326_v8 = vpop.f32.mrf.mxu1  ;;  %1385 = vrsqrt.f32 %v1790_v53  ;;  %vm627_vm12 = vcmp.eq.f32.partialorder %v1786_v45, 0.0 }
 0x12d   : > { %1387 = vrsqrt.f32 %v1804_v2  ;;  %v1811_v10 = vadd.f32 1e-08, %v565_v4  ;;  %v551_v11 = vadd.f32 %v1768_v63, %v531_v5  ;;  %v517_v12 = vmul.f32 2.0, %v1326_v8 }
 0x12e   : > { %v564_v14 = vmax.f32 %v548_v6, 0.0  ;;  %v530_v15 = vsub.f32 %v174_v52, %v514_v7  ;;  %v485_v16 = vpop.f32.mrf.mxu1  ;;  %v596_v18 = vmul.f32 %v1374_v1, %v1772_v17  ;;  %v1376_v20 = vpop.eup %1375  ;;  %vm618_vm13 = vcmp.eq.f32.partialorder %v1793_v54, inf }
 0x12f   : > { %1389 = vrsqrt.f32 %v1811_v10  ;;  %v567_v21 = vmax.f32 %v551_v11, 0.0  ;;  %v533_v22 = vsub.f32 %v183_v0, %v517_v12  ;;  %v516_v24 = vmul.f32 2.0, %v485_v16 }
 0x130   : > { %v1820_v25 = vadd.f32 1e-08, %v564_v14  ;;  %v550_v26 = vadd.f32 %v1768_v63, %v530_v15  ;;  %v1329_v27 = vpop.f32.mrf.mxu1  ;;  %v598_v28 = vsel %vm597_vm3, %v1772_v17, %v596_v18  ;;  %v589_v31 = vmul.f32 %v1376_v20, %v1775_v23  ;;  %v1378_v32 = vpop.eup %1377 }
 0x131   : > { %v1827_v33 = vadd.f32 1e-08, %v567_v21  ;;  %v553_v34 = vadd.f32 %v1768_v63, %v533_v22  ;;  %v519_v35 = vmul.f32 2.0, %v1329_v27  ;;  %v532_v36 = vsub.f32 %v180_v13, %v516_v24 }
 0x132   : > { %1391 = vrsqrt.f32 %v1820_v25  ;;  %v566_v37 = vmax.f32 %v550_v26, 0.0  ;;  %v1833_v38 = vsel %vm599_vm4, %v600_v56, %v598_v28  ;;  %v495_v39 = vpop.f32.mrf.mxu1  ;;  %v591_v40 = vsel %vm590_vm5, %v1775_v23, %v589_v31 }
 0x133   : > { %1393 = vrsqrt.f32 %v1827_v33  ;;  %v569_v41 = vmax.f32 %v553_v34, 0.0  ;;  %v552_v42 = vadd.f32 %v1768_v63, %v532_v36  ;;  %702 = vadd.xlane.f32.xlu1 %v1833_v38  ;;  %v535_v43 = vsub.f32 %v189_v30, %v519_v35 }
 0x134   : > { %v1842_v46 = vadd.f32 1e-08, %v566_v37  ;;  %v518_v17 = vmul.f32 2.0, %v495_v39  ;;  %v1846_v47 = vsel %vm592_vm6, %v593_v3, %v591_v40  ;;  %v610_v48 = vmul.f32 %v1378_v32, %v1779_v29 }
 0x135   : > { %v1380_v49 = vpop.eup %1379  ;;  %v1850_v50 = vadd.f32 1e-08, %v569_v41  ;;  %v568_v51 = vmax.f32 %v552_v42, 0.0  ;;  %v555_v52 = vadd.f32 %v1768_v63, %v535_v43  ;;  %700 = vadd.xlane.f32.xlu0 %v1846_v47  ;;  %v732_v55 = vadd.f32 %v1833_v38, %v1846_v47 }
 0x136   : > { %1395 = vrsqrt.f32 %v1842_v46  ;;  %v534_v23 = vsub.f32 %v186_v44, %v518_v17  ;;  %v612_v56 = vsel %vm611_vm7, %v1779_v29, %v610_v48  ;;  %v624_v58 = vmul.f32 %v1380_v49, %v1786_v45 }
 0x137   : > { %v1382_v59 = vpop.eup %1381  ;;  %1397 = vrsqrt.f32 %v1850_v50  ;;  %v1862_v60 = vadd.f32 1e-08, %v568_v51  ;;  %v571_v61 = vmax.f32 %v555_v52, 0.0  ;;  %v1868_v62 = vsel %vm613_vm8, %v614_v9, %v612_v56 }
 0x138   : > { %v1384_v0 = vpop.eup %1383  ;;  %v554_v3 = vadd.f32 %v1768_v63, %v534_v23  ;;  %706 = vadd.xlane.f32.xlu1 %v1868_v62  ;;  %v626_v4 = vsel %vm625_vm9, %v1786_v45, %v624_v58  ;;  %v617_v5 = vmul.f32 %v1382_v59, %v1793_v54  ;;  %v607_v29 = vand.u32 2147483648, %v1790_v53 }
 0x139   : > { %v1386_v1 = vpop.eup %1385  ;;  %1399 = vrsqrt.f32 %v1862_v60  ;;  %v1878_v6 = vadd.f32 1e-08, %v571_v61  ;;  %v1881_v7 = vsel %vm627_vm12, %v628_v19, %v626_v4  ;;  %vm620_vm14 = vcmp.eq.f32.partialorder %v1793_v54, 0.0 }
 0x13a   : > { %v1388_v63 = vpop.eup %1387  ;;  %v570_v8 = vmax.f32 %v554_v3, 0.0  ;;  %v603_v9 = vmul.f32 %v1386_v1, %v1790_v53  ;;  %v619_v45 = vsel %vm618_vm13, %v1793_v54, %v617_v5  ;;  %v621_v11 = vand.u32 2147483648, %v1793_v54 }
 0x13b   : > { %1401 = vrsqrt.f32 %v1878_v6  ;;  %v638_v12 = vmul.f32 %v1384_v0, %v1796_v57  ;;  %vm639_vm15 = vcmp.eq.f32.partialorder %v1796_v57, inf  ;;  %v642_v16 = vand.u32 2147483648, %v1796_v57 }
 0x13c   : > { %v1390_v13 = vpop.eup %1389  ;;  %v1890_v14 = vadd.f32 1e-08, %v570_v8  ;;  %v605_v15 = vsel %vm604_vm10, %v1790_v53, %v603_v9  ;;  %710 = vadd.xlane.f32.xlu1 %v1881_v7  ;;  %vm641_vm0 = vcmp.eq.f32.partialorder %v1796_v57, 0.0  ;;  %v631_v20 = vmul.f32 %v1388_v63, %v1804_v2 }
 0x13d   : > { %v1900_v18 = vsel %vm606_vm11, %v607_v29, %v605_v15  ;;  %v640_v19 = vsel %vm639_vm15, %v1796_v57, %v638_v12  ;;  %vm632_vm1 = vcmp.eq.f32.partialorder %v1804_v2, inf  ;;  %v1913_v53 = vsel %vm620_vm14, %v621_v11, %v619_v45 }
 0x13e   : > { %1403 = vrsqrt.f32 %v1890_v14  ;;  %704 = vadd.xlane.f32.xlu0 %v1900_v18  ;;  %v733_v21 = vadd.f32 %v732_v55, %v1900_v18  ;;  %v1908_v22 = vsel %vm641_vm0, %v642_v16, %v640_v19  ;;  %v633_v26 = vsel %vm632_vm1, %v1804_v2, %v631_v20 }
 0x13f   : > { %v1392_v24 = vpop.eup %1391  ;;  %v652_v57 = vmul.f32 %v1390_v13, %v1811_v10  ;;  %vm653_vm2 = vcmp.eq.f32.partialorder %v1811_v10, inf  ;;  %v656_v30 = vand.u32 2147483648, %v1811_v10  ;;  %v635_v32 = vand.u32 2147483648, %v1804_v2 }
 0x140   : > { %v1394_v27 = vpop.eup %1393  ;;  %v734_v28 = vadd.f32 %v733_v21, %v1868_v62  ;;  %714 = vadd.xlane.f32.xlu1 %v1908_v22  ;;  %v645_v31 = vmul.f32 %v1392_v24, %v1820_v25  ;;  %vm655_vm3 = vcmp.eq.f32.partialorder %v1811_v10, 0.0  ;;  %vm634_vm4 = vcmp.eq.f32.partialorder %v1804_v2, 0.0 }
 0x141   : > { %v654_v54 = vsel %vm653_vm2, %v1811_v10, %v652_v57  ;;  %vm646_vm5 = vcmp.eq.f32.partialorder %v1820_v25, inf  ;;  %v1931_v37 = vsel %vm634_vm4, %v635_v32, %v633_v26  ;;  %v666_v40 = vmul.f32 %v1394_v27, %v1827_v33 }
 0x142   : > { %708 = vadd.xlane.f32.xlu0 %v1913_v53  ;;  %v735_v34 = vadd.f32 %v734_v28, %v1913_v53  ;;  %v1928_v35 = vsel %vm655_vm3, %v656_v30, %v654_v54  ;;  %v647_v39 = vsel %vm646_vm5, %v1820_v25, %v645_v31  ;;  %vm667_vm6 = vcmp.eq.f32.partialorder %v1827_v33, inf }
 0x143   : > { %v1396_v36 = vpop.eup %1395  ;;  %v670_v2 = vand.u32 2147483648, %v1827_v33  ;;  %v649_v43 = vand.u32 2147483648, %v1820_v25  ;;  %v668_v44 = vsel %vm667_vm6, %v1827_v33, %v666_v40  ;;  %vm669_vm7 = vcmp.eq.f32.partialorder %v1827_v33, 0.0 }
 0x144   : > { %v1398_v41 = vpop.eup %1397  ;;  %v736_v10 = vadd.f32 %v735_v34, %v1881_v7  ;;  %718 = vadd.xlane.f32.xlu1 %v1928_v35  ;;  %v659_v42 = vmul.f32 %v1396_v36, %v1842_v46  ;;  %vm648_vm8 = vcmp.eq.f32.partialorder %v1820_v25, 0.0  ;;  %vm681_vm9 = vcmp.eq.f32.partialorder %v1850_v50, inf }
 0x145   : > { %v680_v17 = vmul.f32 %v1398_v41, %v1850_v50  ;;  %v1947_v51 = vsel %vm669_vm7, %v670_v2, %v668_v44  ;;  %v1950_v52 = vsel %vm648_vm8, %v649_v43, %v647_v39  ;;  %vm660_vm10 = vcmp.eq.f32.partialorder %v1842_v46, inf }
 0x146   : > { %v1400_v48 = vpop.eup %1399  ;;  %712 = vadd.xlane.f32.xlu0 %v1931_v37  ;;  %v737_v49 = vadd.f32 %v736_v10, %v1931_v37  ;;  %v684_v33 = vand.u32 2147483648, %v1850_v50  ;;  %v661_v58 = vsel %vm660_vm10, %v1842_v46, %v659_v42  ;;  %vm683_vm11 = vcmp.eq.f32.partialorder %v1850_v50, 0.0 }
 0x147   : > { %v682_v55 = vsel %vm681_vm9, %v1850_v50, %v680_v17  ;;  %v673_v25 = vmul.f32 %v1400_v48, %v1862_v60  ;;  %v663_v59 = vand.u32 2147483648, %v1842_v46  ;;  %vm662_vm12 = vcmp.eq.f32.partialorder %v1842_v46, 0.0 }
 0x148   : > { %v1402_v23 = vpop.eup %1401  ;;  %v738_v56 = vadd.f32 %v737_v49, %v1908_v22  ;;  %722 = vadd.xlane.f32.xlu1 %v1947_v51  ;;  %v1961_v61 = vsel %vm683_vm11, %v684_v33, %v682_v55  ;;  %vm695_vm13 = vcmp.eq.f32.partialorder %v1878_v6, inf  ;;  %vm674_vm14 = vcmp.eq.f32.partialorder %v1862_v60, inf }
 0x149   : > { %v694_v0 = vmul.f32 %v1402_v23, %v1878_v6  ;;  %v1968_v5 = vsel %vm662_vm12, %v663_v59, %v661_v58  ;;  %v698_v1 = vand.u32 2147483648, %v1878_v6  ;;  %v675_v63 = vsel %vm674_vm14, %v1862_v60, %v673_v25 }
 0x14a   : > { %716 = vadd.xlane.f32.xlu0 %v1950_v52  ;;  %v739_v3 = vadd.f32 %v738_v56, %v1950_v52  ;;  %vm697_vm15 = vcmp.eq.f32.partialorder %v1878_v6, 0.0  ;;  %v677_v8 = vand.u32 2147483648, %v1862_v60  ;;  %vm676_vm0 = vcmp.eq.f32.partialorder %v1862_v60, 0.0 }
 0x14b   : > { %v1404_v4 = vpop.eup %1403  ;;  %v696_v50 = vsel %vm695_vm13, %v1878_v6, %v694_v0  ;;  %vm688_vm1 = vcmp.eq.f32.partialorder %v1890_v14, inf  ;;  %v691_v13 = vand.u32 2147483648, %v1890_v14  ;;  %vm690_vm2 = vcmp.eq.f32.partialorder %v1890_v14, 0.0 }
 0x14c   : > { %v740_v29 = vadd.f32 %v739_v3, %v1928_v35  ;;  %726 = vadd.xlane.f32.xlu1 %v1961_v61  ;;  %v687_v46 = vmul.f32 %v1404_v4, %v1890_v14  ;;  %v1979_v9 = vsel %vm697_vm15, %v698_v1, %v696_v50  ;;  %v1984_v11 = vsel %vm676_vm0, %v677_v8, %v675_v63 }
 0x14d   : > { %vm938_vm3 = vcmask 0  }
 0x14e   : > { %720 = vadd.xlane.f32.xlu0 %v1968_v5  ;;  %v741_v45 = vadd.f32 %v740_v29, %v1968_v5  ;;  %v689_v6 = vsel %vm688_vm1, %v1890_v14, %v687_v46 }
 0x14f   : > { %v1994_v16 = vsel %vm690_vm2, %v691_v13, %v689_v6 }
 0x150   : > { %v742_v12 = vadd.f32 %v741_v45, %v1947_v51  ;;  %730 = vadd.xlane.f32.xlu1 %v1979_v9 }
 0x152   : > { %724 = vadd.xlane.f32.xlu0 %v1984_v11  ;;  %v743_v15 = vadd.f32 %v742_v12, %v1984_v11 }
 0x154   : > { %v744_v60 = vadd.f32 %v743_v15, %v1961_v61 }
 0x156   : > { %728 = vadd.xlane.f32.xlu0 %v1994_v16  ;;  %v745_v19 = vadd.f32 %v744_v60, %v1994_v16 }
 0x158   : > { %v746_v20 = vadd.f32 %v745_v19, %v1979_v9 }
 0x15a   : > { %v747_v21 = vrot.slane %v746_v20, 4 }
 0x15c   : > { %v748_v24 = vadd.f32 %v747_v21, %v746_v20 }
 0x15e   : > { %v749_v26 = vrot.slane %v748_v24, 2 }
 0x160   : > { %v750_v57 = vadd.f32 %v749_v26, %v748_v24 }
 0x162   : > { %v751_v27 = vrot.slane %v750_v57, 1 }
 0x164   : > { %v752_v28 = vadd.f32 %v751_v27, %v750_v57 }
 0x166   : > { %v2000_v30 = vmul.f32 0.0078125, %v752_v28 }
 0x168   : > { %v776_v31 = vsub.f32 %v1833_v38, %v2000_v30  ;;  %v775_v32 = vsub.f32 %v1846_v47, %v2000_v30  ;;  %v778_v54 = vsub.f32 %v1868_v62, %v2000_v30  ;;  %v777_v34 = vsub.f32 %v1900_v18, %v2000_v30 }
 0x169   : > { %v780_v36 = vsub.f32 %v1881_v7, %v2000_v30  ;;  %v779_v39 = vsub.f32 %v1913_v53, %v2000_v30  ;;  %v782_v40 = vsub.f32 %v1908_v22, %v2000_v30  ;;  %v781_v38 = vsub.f32 %v1931_v37, %v2000_v30 }
 0x16a   : > { %v784_v47 = vsub.f32 %v1928_v35, %v2000_v30  ;;  %v783_v62 = vsub.f32 %v1950_v52, %v2000_v30  ;;  %v786_v18 = vsub.f32 %v1947_v51, %v2000_v30  ;;  %v785_v7 = vsub.f32 %v1968_v5, %v2000_v30 }
 0x16b   : > { %v788_v41 = vsub.f32 %v1961_v61, %v2000_v30  ;;  %v787_v10 = vsub.f32 %v1984_v11, %v2000_v30  ;;  %v790_v2 = vsub.f32 %v1979_v9, %v2000_v30 }
 0x1bc   : > { %v703_v42 = vpop.xlane.xlu1 %702 }
 0x1bd   : > { %v792_v27 = vmul.f32 0.0078125, %v703_v42 }
 0x1be   : > { %v701_v43 = vpop.xlane.xlu0 %700 }
 0x1bf   : > { %v753_v48 = vadd.f32 %v703_v42, %v701_v43  ;;  %v791_v28 = vmul.f32 0.0078125, %v701_v43 }
 0x1c1   : > { %v707_v44 = vpop.xlane.xlu1 %706 }
 0x1c5   : > { %v711_v17 = vpop.xlane.xlu1 %710 }
 0x1c7   : > { %v705_v49 = vpop.xlane.xlu0 %704 }
 0x1c8   : > { %v754_v55 = vadd.f32 %v753_v48, %v705_v49  ;;  %v794_v48 = vmul.f32 0.0078125, %v707_v44 }
 0x1c9   : > { %v715_v33 = vpop.xlane.xlu1 %714 }
 0x1ca   : > { %v755_v23 = vadd.f32 %v754_v55, %v707_v44  ;;  %v793_v55 = vmul.f32 0.0078125, %v705_v49 }
 0x1cb   : > { %v709_v56 = vpop.xlane.xlu0 %708 }
 0x1cc   : > { %v756_v58 = vadd.f32 %v755_v23, %v709_v56  ;;  %v796_v23 = vmul.f32 0.0078125, %v711_v17 }
 0x1cd   : > { %v719_v0 = vpop.xlane.xlu1 %718 }
 0x1ce   : > { %v757_v25 = vadd.f32 %v756_v58, %v711_v17  ;;  %v812_v14 = vsub.f32 %v780_v36, %v796_v23 }
 0x1cf   : > { %v713_v59 = vpop.xlane.xlu0 %712 }
 0x1d0   : > { %v758_v3 = vadd.f32 %v757_v25, %v713_v59  ;;  %v795_v25 = vmul.f32 0.0078125, %v709_v56 }
 0x1d1   : > { %v723_v29 = vpop.xlane.xlu1 %722 }
 0x1d2   : > { %v759_v4 = vadd.f32 %v758_v3, %v715_v33  ;;  %v798_v3 = vmul.f32 0.0078125, %v715_v33  ;;  %v811_v42 = vsub.f32 %v779_v39, %v795_v25 }
 0x1d3   : > { %v717_v50 = vpop.xlane.xlu0 %716 }
 0x1d4   : > { %v760_v1 = vadd.f32 %v759_v4, %v717_v50  ;;  %v797_v4 = vmul.f32 0.0078125, %v713_v59  ;;  %v814_v43 = vsub.f32 %v782_v40, %v798_v3 }
 0x1d5   : > { %v727_v12 = vpop.xlane.xlu1 %726 }
 0x1d6   : > { %v761_v63 = vadd.f32 %v760_v1, %v719_v0  ;;  %v800_v1 = vmul.f32 0.0078125, %v719_v0  ;;  %v813_v44 = vsub.f32 %v781_v38, %v797_v4 }
 0x1d7   : > { %v721_v46 = vpop.xlane.xlu0 %720 }
 0x1d8   : > { %v762_v8 = vadd.f32 %v761_v63, %v721_v46  ;;  %v802_v63 = vmul.f32 0.0078125, %v723_v29  ;;  %v801_v36 = vmul.f32 0.0078125, %v721_v46 }
 0x1d9   : > { %v731_v20 = vpop.xlane.xlu1 %730 }
 0x1da   : > { %v763_v45 = vadd.f32 %v762_v8, %v723_v29  ;;  %v806_v17 = vmul.f32 0.0078125, %v731_v20  ;;  %v817_v61 = vsub.f32 %v785_v7, %v801_v36 }
 0x1db   : > { %v725_v6 = vpop.xlane.xlu0 %724 }
 0x1dc   : > { %v764_v13 = vadd.f32 %v763_v45, %v725_v6  ;;  %v808_v45 = vsub.f32 %v776_v31, %v792_v27  ;;  %v816_v31 = vsub.f32 %v784_v47, %v800_v1  ;;  %v803_v39 = vmul.f32 0.0078125, %v725_v6 }
 0x1de   : > { %v765_v15 = vadd.f32 %v764_v13, %v727_v12  ;;  %v807_v13 = vsub.f32 %v775_v32, %v791_v28  ;;  %v799_v32 = vmul.f32 0.0078125, %v717_v50 }
 0x1df   : > { %v729_v60 = vpop.xlane.xlu0 %728 }
 0x1e0   : > { %v766_v19 = vadd.f32 %v765_v15, %v729_v60  ;;  %v810_v15 = vsub.f32 %v778_v54, %v794_v48  ;;  %v818_v54 = vsub.f32 %v786_v18, %v802_v63  ;;  %v805_v22 = vmul.f32 0.0078125, %v729_v60 }
 0x1e1   : > { %v815_v33 = vsub.f32 %v783_v62, %v799_v32  ;;  %v822_v62 = vsub.f32 %v790_v2, %v806_v17 }
 0x1e2   : > { %v767_v21 = vadd.f32 %v766_v19, %v731_v20  ;;  %v809_v19 = vsub.f32 %v777_v34, %v793_v55  ;;  %v804_v34 = vmul.f32 0.0078125, %v727_v12 }
 0x1e4   : > { %v768_v24 = vrot.slane %v767_v21, 4  ;;  %v820_v56 = vsub.f32 %v788_v41, %v804_v34  ;;  %v2249_v41 = vsub.f32 %v1994_v16, %v2000_v30 }
 0x1e6   : > { %v769_v26 = vadd.f32 %v768_v24, %v767_v21  ;;  %v821_v0 = vsub.f32 %v2249_v41, %v805_v22 }
 0x1e8   : > { %v770_v57 = vrot.slane %v769_v26, 2 }
 0x1ea   : > { %v771_v58 = vadd.f32 %v770_v57, %v769_v26 }
 0x1ec   : > { %v772_v8 = vrot.slane %v771_v58, 1 }
 0x1ee   : > { %v773_v21 = vadd.f32 %v772_v8, %v771_v58 }
 0x1f0   : > { %v823_v53 = vmul.f32 6.1035156e-05, %v773_v21 }
 0x1f2   : > { %v2050_v40 = vadd.f32 %v823_v53, %v808_v45  ;;  %v2052_v49 = vadd.f32 %v823_v53, %v807_v13  ;;  %v2054_v37 = vadd.f32 %v823_v53, %v810_v15  ;;  %v2056_v38 = vadd.f32 %v823_v53, %v809_v19 }
 0x1f3   : > { %v2058_v35 = vadd.f32 %v823_v53, %v812_v14  ;;  %v2060_v47 = vadd.f32 %v823_v53, %v811_v42  ;;  %v2062_v51 = vadd.f32 %v823_v53, %v814_v43  ;;  %v2064_v18 = vadd.f32 %v823_v53, %v813_v44 }
 0x1f4   : > { %v859_v59 = vmul.f32 %v2050_v40, %v2050_v40  ;;  %843 = vst [vmem:[%s2074_s14 + $0x8] sm:$0xff] %v2050_v40  ;;  %v858_v52 = vmul.f32 %v2052_v49, %v2052_v49  ;;  %842 = vst [vmem:[%s2074_s14] sm:$0xff] %v2052_v49  ;;  %v819_v14 = vsub.f32 %v787_v10, %v803_v39 }
 0x1f5   : > { %845 = vst [vmem:[%s2074_s14 + $0x18] sm:$0xff] %v2054_v37  ;;  %844 = vst [vmem:[%s2074_s14 + $0x10] sm:$0xff] %v2056_v38  ;;  %v2106_v5 = vadd.f32 %v823_v53, %v816_v31  ;;  %v2108_v9 = vadd.f32 %v823_v53, %v815_v33  ;;  %v2110_v11 = vadd.f32 %v823_v53, %v818_v54 }
 0x1f6   : > { %847 = vst [vmem:[%s2074_s14 + $0x28] sm:$0xff] %v2058_v35  ;;  %846 = vst [vmem:[%s2074_s14 + $0x20] sm:$0xff] %v2060_v47  ;;  %876 = vadd.xlane.f32.xlu1 %v859_v59  ;;  %874 = vadd.xlane.f32.xlu0 %v858_v52  ;;  %v2112_v16 = vadd.f32 %v823_v53, %v817_v61  ;;  %v2114_v30 = vadd.f32 %v823_v53, %v820_v56 }
 0x1f7   : > { %849 = vst [vmem:[%s2074_s14 + $0x38] sm:$0xff] %v2062_v51  ;;  %848 = vst [vmem:[%s2074_s14 + $0x30] sm:$0xff] %v2064_v18  ;;  %v2116_v7 = vadd.f32 %v823_v53, %v819_v14  ;;  %v2118_v10 = vadd.f32 %v823_v53, %v822_v62  ;;  %v861_v2 = vmul.f32 %v2054_v37, %v2054_v37 }
 0x1f8   : > { %v860_v50 = vmul.f32 %v2056_v38, %v2056_v38  ;;  %851 = vst [vmem:[%s2074_s14 + $0x48] sm:$0xff] %v2106_v5  ;;  %850 = vst [vmem:[%s2074_s14 + $0x40] sm:$0xff] %v2108_v9  ;;  %v2130_v29 = vadd.f32 %v823_v53, %v821_v0  ;;  %v863_v46 = vmul.f32 %v2058_v35, %v2058_v35 }
 0x1f9   : > { %853 = vst [vmem:[%s2074_s14 + $0x58] sm:$0xff] %v2110_v11  ;;  %852 = vst [vmem:[%s2074_s14 + $0x50] sm:$0xff] %v2112_v16  ;;  %v862_v12 = vmul.f32 %v2060_v47, %v2060_v47  ;;  %v865_v6 = vmul.f32 %v2062_v51, %v2062_v51  ;;  %v864_v60 = vmul.f32 %v2064_v18, %v2064_v18 }
 0x1fa   : > { %855 = vst [vmem:[%s2074_s14 + $0x68] sm:$0xff] %v2114_v30  ;;  %854 = vst [vmem:[%s2074_s14 + $0x60] sm:$0xff] %v2116_v7  ;;  %880 = vadd.xlane.f32.xlu1 %v861_v2  ;;  %878 = vadd.xlane.f32.xlu0 %v860_v50  ;;  %v867_v20 = vmul.f32 %v2106_v5, %v2106_v5  ;;  %v866_v24 = vmul.f32 %v2108_v9, %v2108_v9 }
 0x1fb   : > { %857 = vst [vmem:[%s2074_s14 + $0x78] sm:$0xff] %v2118_v10  ;;  %856 = vst [vmem:[%s2074_s14 + $0x70] sm:$0xff] %v2130_v29  ;;  %v869_v26 = vmul.f32 %v2110_v11, %v2110_v11  ;;  %v868_v57 = vmul.f32 %v2112_v16, %v2112_v16  ;;  %v871_v27 = vmul.f32 %v2114_v30, %v2114_v30 }
 0x1fc   : > { %v870_v28 = vmul.f32 %v2116_v7, %v2116_v7  ;;  %v873_v48 = vmul.f32 %v2118_v10, %v2118_v10  ;;  %v872_v55 = vmul.f32 %v2130_v29, %v2130_v29 }
 0x1fe   : > { %884 = vadd.xlane.f32.xlu1 %v863_v46  ;;  %882 = vadd.xlane.f32.xlu0 %v862_v12 }
 0x202   : > { %888 = vadd.xlane.f32.xlu1 %v865_v6  ;;  %886 = vadd.xlane.f32.xlu0 %v864_v60 }
 0x206   : > { %892 = vadd.xlane.f32.xlu1 %v867_v20  ;;  %890 = vadd.xlane.f32.xlu0 %v866_v24 }
 0x20a   : > { %896 = vadd.xlane.f32.xlu1 %v869_v26  ;;  %894 = vadd.xlane.f32.xlu0 %v868_v57 }
 0x20e   : > { %900 = vadd.xlane.f32.xlu1 %v871_v27  ;;  %898 = vadd.xlane.f32.xlu0 %v870_v28  ;;  %v2172_v28 = vmov 0.0  }
 0x212   : > { %904 = vadd.xlane.f32.xlu1 %v873_v48  ;;  %902 = vadd.xlane.f32.xlu0 %v872_v55 }
 0x27f   : > { %v877_v23 = vpop.xlane.xlu1 %876  ;;  %v875_v58 = vpop.xlane.xlu0 %874 }
 0x280   : > { %v906_v25 = vadd.f32 %v877_v23, %v875_v58 }
 0x283   : > { %v881_v3 = vpop.xlane.xlu1 %880  ;;  %v879_v4 = vpop.xlane.xlu0 %878 }
 0x284   : > { %v907_v1 = vadd.f32 %v906_v25, %v879_v4 }
 0x286   : > { %v908_v63 = vadd.f32 %v907_v1, %v881_v3 }
 0x287   : > { %v885_v8 = vpop.xlane.xlu1 %884  ;;  %v883_v45 = vpop.xlane.xlu0 %882 }
 0x288   : > { %v909_v13 = vadd.f32 %v908_v63, %v883_v45 }
 0x28a   : > { %v910_v15 = vadd.f32 %v909_v13, %v885_v8 }
 0x28b   : > { %v889_v19 = vpop.xlane.xlu1 %888  ;;  %v887_v21 = vpop.xlane.xlu0 %886 }
 0x28c   : > { %v911_v42 = vadd.f32 %v910_v15, %v887_v21 }
 0x28e   : > { %v912_v43 = vadd.f32 %v911_v42, %v889_v19 }
 0x28f   : > { %v893_v44 = vpop.xlane.xlu1 %892  ;;  %v891_v31 = vpop.xlane.xlu0 %890 }
 0x290   : > { %v913_v32 = vadd.f32 %v912_v43, %v891_v31 }
 0x292   : > { %v914_v54 = vadd.f32 %v913_v32, %v893_v44 }
 0x293   : > { %v897_v34 = vpop.xlane.xlu1 %896  ;;  %v895_v53 = vpop.xlane.xlu0 %894 }
 0x294   : > { %v915_v36 = vadd.f32 %v914_v54, %v895_v53 }
 0x296   : > { %v916_v39 = vadd.f32 %v915_v36, %v897_v34 }
 0x297   : > { %v901_v17 = vpop.xlane.xlu1 %900  ;;  %v899_v22 = vpop.xlane.xlu0 %898 }
 0x298   : > { %v917_v33 = vadd.f32 %v916_v39, %v899_v22 }
 0x29a   : > { %v918_v56 = vadd.f32 %v917_v33, %v901_v17 }
 0x29b   : > { %v903_v59 = vpop.xlane.xlu0 %902  ;;  %v905_v61 = vpop.xlane.xlu1 %904 }
 0x29c   : > { %v919_v52 = vadd.f32 %v918_v56, %v903_v59 }
 0x29e   : > { %v920_v14 = vadd.f32 %v919_v52, %v905_v61 }
 0x2a0   : > { %v921_v62 = vrot.slane %v920_v14, 4 }
 0x2a2   : > { %v922_v41 = vadd.f32 %v921_v62, %v920_v14 }
 0x2a4   : > { %v923_v0 = vrot.slane %v922_v41, 2 }
 0x2a6   : > { %v924_v2 = vadd.f32 %v923_v0, %v922_v41 }
 0x2a8   : > { %v925_v50 = vrot.slane %v924_v2, 1 }
 0x2aa   : > { %v926_v46 = vadd.f32 %v925_v50, %v924_v2 }
 0x2ac   : > { %v927_v12 = vmul.f32 6.1035156e-05, %v926_v46 }
 0x2ae   : > { %v928_v6 = vmax.f32 %v927_v12, 0.0 }
 0x2b0   : > { %v929_v60 = vadd.f32 1e-08, %v928_v6 }
 0x2b2   : > { %1405 = vrsqrt.f32 %v929_v60  ;;  %vm932_vm4 = vcmp.eq.f32.partialorder %v929_v60, inf  ;;  %v935_v26 = vand.u32 2147483648, %v929_v60  ;;  %vm934_vm5 = vcmp.eq.f32.partialorder %v929_v60, 0.0 }
 0x2bf   : > { %v1406_v20 = vpop.eup %1405 }
 0x2c0   : > { %v931_v24 = vmul.f32 %v1406_v20, %v929_v60  ;;  %1100 = sbr.rel (%p1180_p5) target bundleno = 928 (0x3a0), region = 60 }
 0x2c2   : > { %v933_v57 = vsel %vm932_vm4, %v929_v60, %v931_v24 }
 0x2c3   : > { %v2166_v27 = vsel %vm934_vm5, %v935_v26, %v933_v57 }
 0x2c4   : > { %1189 = vst.msk [vmem:[%s1187_s15 - $0x1] sm:$0x1] %vm938_vm3, %v2166_v27 }
 0x2c5   : > { %v2174_v48 = vmov 0.0  }
 0x2c6 LB: >> { %s1181_s17 = sshll.u32 %s1467_s16, 7  ;;  %s1044_s19 = scalar_lea.vmem [#allocation3], %s1467_s16  ;;  %s1467_s16 = sphi %s2176_s16, %s943_s16   ;;  %v1463_v48 = vphi %v2174_v48, %v2250_v48  }
 0x2c7   : >> { %s2185_s18 = scalar_lea.vmem [#allocation2], %s1181_s17  ;;  %s943_s16 = sadd.s32 1, %s1467_s16  }
 0x2c8   : >> { %v949_v55 = vld [vmem:[%s2185_s18] sm:$0xff]  ;;  %v951_v23 = vld [vmem:[%s2185_s18 + $0x10] sm:$0xff]  ;;  %v950_v58 = vld [vmem:[%s2185_s18 + $0x8] sm:$0xff]  ;;  %p942_p6 = scmp.ge.s32.totalorder %s943_s16, %s1494_s7 }
 0x2c9   : >> { %v965_v25 = vmul.f32 %v949_v55, %v2052_v49  ;;  %v967_v3 = vmul.f32 %v951_v23, %v2056_v38  ;;  %v952_v4 = vld [vmem:[%s2185_s18 + $0x18] sm:$0xff]  ;;  %v966_v1 = vmul.f32 %v950_v58, %v2050_v40  ;;  %v953_v8 = vld [vmem:[%s2185_s18 + $0x20] sm:$0xff]  ;;  %v954_v45 = vld [vmem:[%s2185_s18 + $0x28] sm:$0xff] }
 0x2ca   : >> { %v968_v63 = vmul.f32 %v952_v4, %v2054_v37  ;;  %v969_v13 = vmul.f32 %v953_v8, %v2060_v47  ;;  %v970_v15 = vmul.f32 %v954_v45, %v2058_v35  ;;  %v955_v19 = vld [vmem:[%s2185_s18 + $0x30] sm:$0xff]  ;;  %v956_v21 = vld [vmem:[%s2185_s18 + $0x38] sm:$0xff]  ;;  %v957_v44 = vld [vmem:[%s2185_s18 + $0x40] sm:$0xff] }
 0x2cb   : >> { %981 = vadd.xlane.f32.xlu0 %v965_v25  ;;  %985 = vadd.xlane.f32.xlu1 %v967_v3  ;;  %v971_v42 = vmul.f32 %v955_v19, %v2064_v18  ;;  %v972_v43 = vmul.f32 %v956_v21, %v2062_v51  ;;  %v958_v31 = vld [vmem:[%s2185_s18 + $0x48] sm:$0xff]  ;;  %v973_v32 = vmul.f32 %v957_v44, %v2108_v9  ;;  %v959_v34 = vld [vmem:[%s2185_s18 + $0x50] sm:$0xff]  ;;  %v960_v53 = vld [vmem:[%s2185_s18 + $0x58] sm:$0xff] }
 0x2cc   : >> { %v974_v54 = vmul.f32 %v958_v31, %v2106_v5  ;;  %v975_v36 = vmul.f32 %v959_v34, %v2112_v16  ;;  %v976_v39 = vmul.f32 %v960_v53, %v2110_v11  ;;  %v961_v17 = vld [vmem:[%s2185_s18 + $0x60] sm:$0xff]  ;;  %v962_v22 = vld [vmem:[%s2185_s18 + $0x68] sm:$0xff]  ;;  %v963_v59 = vld [vmem:[%s2185_s18 + $0x70] sm:$0xff] }
 0x2cd   : >> { %v977_v33 = vmul.f32 %v961_v17, %v2116_v7  ;;  %v978_v56 = vmul.f32 %v962_v22, %v2114_v30  ;;  %v964_v52 = vld [vmem:[%s2185_s18 + $0x78] sm:$0xff]  ;;  %v979_v61 = vmul.f32 %v963_v59, %v2130_v29  ;;  %v1045_v28 = vld [vmem:[%s1044_s19] sm:$0x1] }
 0x2ce   : >> { %v980_v14 = vmul.f32 %v964_v52, %v2118_v10  ;;  %v1046_v3 = vmul.f32 %v1045_v28, %v2166_v27 }
 0x2cf   : >> { %983 = vadd.xlane.f32.xlu0 %v966_v1  ;;  %987 = vadd.xlane.f32.xlu1 %v968_v63 }
 0x2d0   : >> { %v1047_v45 = vmax.f32 %v1046_v3, 0.0 }
 0x2d2   : >> { %1407 = vrsqrt.f32 %v1047_v45  ;;  %vm1050_vm6 = vcmp.eq.f32.partialorder %v1047_v45, inf  ;;  %vm1052_vm7 = vcmp.eq.f32.partialorder %v1047_v45, 0.0 }
 0x2d3   : >> { %989 = vadd.xlane.f32.xlu0 %v969_v13  ;;  %991 = vadd.xlane.f32.xlu1 %v970_v15 }
 0x2d7   : >> { %993 = vadd.xlane.f32.xlu0 %v971_v42  ;;  %995 = vadd.xlane.f32.xlu1 %v972_v43 }
 0x2db   : >> { %997 = vadd.xlane.f32.xlu0 %v973_v32  ;;  %999 = vadd.xlane.f32.xlu1 %v974_v54 }
 0x2df   : >> { %1001 = vadd.xlane.f32.xlu0 %v975_v36  ;;  %1003 = vadd.xlane.f32.xlu1 %v976_v39  ;;  %v1408_v36 = vpop.eup %1407 }
 0x2e0   : >> { %v1049_v17 = vmul.f32 %v1408_v36, %v1047_v45 }
 0x2e2   : >> { %v1051_v59 = vsel %vm1050_vm6, %v1047_v45, %v1049_v17 }
 0x2e3   : >> { %1005 = vadd.xlane.f32.xlu0 %v977_v33  ;;  %1007 = vadd.xlane.f32.xlu1 %v978_v56  ;;  %v1053_v56 = vand.u32 2147483648, %v1047_v45 }
 0x2e7   : >> { %1009 = vadd.xlane.f32.xlu0 %v979_v61  ;;  %1011 = vadd.xlane.f32.xlu1 %v980_v14  ;;  %v1054_v14 = vsel %vm1052_vm7, %v1053_v56, %v1051_v59 }
 0x354   : >> { %v982_v62 = vpop.xlane.xlu0 %981  ;;  %v986_v41 = vpop.xlane.xlu1 %985 }
 0x358   : >> { %v984_v0 = vpop.xlane.xlu0 %983  ;;  %v988_v2 = vpop.xlane.xlu1 %987 }
 0x359   : >> { %v1013_v50 = vadd.f32 %v984_v0, %v982_v62 }
 0x35b   : >> { %v1014_v46 = vadd.f32 %v1013_v50, %v986_v41  ;;  %v1055_v41 = vadd.f32 1e-10, %v1054_v14 }
 0x35c   : >> { %v990_v12 = vpop.xlane.xlu0 %989  ;;  %v992_v6 = vpop.xlane.xlu1 %991 }
 0x35d   : >> { %v1015_v60 = vadd.f32 %v1014_v46, %v988_v2 }
 0x35f   : >> { %v1016_v20 = vadd.f32 %v1015_v60, %v990_v12 }
 0x360   : >> { %v994_v24 = vpop.xlane.xlu0 %993  ;;  %v996_v26 = vpop.xlane.xlu1 %995 }
 0x361   : >> { %v1017_v57 = vadd.f32 %v1016_v20, %v992_v6 }
 0x363   : >> { %v1018_v55 = vadd.f32 %v1017_v57, %v994_v24 }
 0x364   : >> { %v998_v23 = vpop.xlane.xlu0 %997  ;;  %v1000_v58 = vpop.xlane.xlu1 %999 }
 0x365   : >> { %v1019_v25 = vadd.f32 %v1018_v55, %v996_v26 }
 0x367   : >> { %v1020_v4 = vadd.f32 %v1019_v25, %v998_v23 }
 0x368   : >> { %v1002_v1 = vpop.xlane.xlu0 %1001  ;;  %v1004_v63 = vpop.xlane.xlu1 %1003 }
 0x369   : >> { %v1021_v8 = vadd.f32 %v1020_v4, %v1000_v58 }
 0x36b   : >> { %v1022_v13 = vadd.f32 %v1021_v8, %v1002_v1 }
 0x36c   : >> { %v1006_v15 = vpop.xlane.xlu0 %1005  ;;  %v1008_v19 = vpop.xlane.xlu1 %1007 }
 0x36d   : >> { %v1023_v21 = vadd.f32 %v1022_v13, %v1004_v63 }
 0x36f   : >> { %v1024_v42 = vadd.f32 %v1023_v21, %v1006_v15 }
 0x370   : >> { %v1010_v43 = vpop.xlane.xlu0 %1009  ;;  %v1012_v31 = vpop.xlane.xlu1 %1011 }
 0x371   : >> { %v1025_v44 = vadd.f32 %v1024_v42, %v1008_v19 }
 0x373   : >> { %v1026_v32 = vadd.f32 %v1025_v44, %v1010_v43 }
 0x375   : >> { %v1027_v54 = vadd.f32 %v1026_v32, %v1012_v31 }
 0x377   : >> { %v1028_v34 = vrot.slane %v1027_v54, 4 }
 0x379   : >> { %v1029_v53 = vadd.f32 %v1028_v34, %v1027_v54 }
 0x37b   : >> { %v1030_v39 = vrot.slane %v1029_v53, 2 }
 0x37d   : >> { %v1031_v22 = vadd.f32 %v1030_v39, %v1029_v53 }
 0x37f   : >> { %v1032_v33 = vrot.slane %v1031_v22, 1 }
 0x381   : >> { %v1033_v52 = vadd.f32 %v1032_v33, %v1031_v22 }
 0x383   : >> { %v1034_v61 = vmul.f32 6.1035156e-05, %v1033_v52 }
 0x385   : >> { %v1035_v62 = vmax.f32 %v1034_v61, 0.0 }
 0x387   : >> { %v1036_v0 = vadd.f32 1e-08, %v1035_v62 }
 0x389   : >> { %1409 = vrsqrt.f32 %v1036_v0  ;;  %vm1039_vm8 = vcmp.eq.f32.partialorder %v1036_v0, inf  ;;  %v1042_v12 = vand.u32 2147483648, %v1036_v0  ;;  %vm1041_vm9 = vcmp.eq.f32.partialorder %v1036_v0, 0.0 }
 0x38a   : >> { %1411 = vrcp.f32 %v1055_v41 }
 0x396   : >> { %v1410_v2 = vpop.eup %1409 }
 0x397   : >> { %v1038_v50 = vmul.f32 %v1410_v2, %v1036_v0  ;;  %v1412_v46 = vpop.eup %1411 }
 0x399   : >> { %v1040_v6 = vsel %vm1039_vm8, %v1036_v0, %v1038_v50 }
 0x39a   : >> { %v1043_v60 = vsel %vm1041_vm9, %v1042_v12, %v1040_v6 }
 0x39b   : >> { %v1057_v20 = vmul.f32 %v1412_v46, %v1043_v60  ;;  %945 = sbr.rel (!%p942_p6) target bundleno = 710 (0x2c6), region = 66 }
 0x39d   : >> { %v1058_v24 = vadd.f32 %v1463_v48, %v1057_v20  }
 0x39f   : >> { %v2250_v48 = vmov %v1058_v24  ;;  %v2251_v28 = vmov (%p942_p6), %v1058_v24 }
 0x3a0 PF: > { %v1059_v26 = vld [vmem:[#allocation4] sm:$0x1]  ;;  %p1334_p7 = scmp.eq.s32.totalorder %s1494_s7, 3  ;;  %s1477_s20 = smov [#allocation4]   ;;  %v1471_v28 = vphi %v2172_v28, %v2251_v28  }
 0x3a1   : > { %v1060_v48 = vadd.f32 %v1471_v28, %v1059_v26  ;;  %s1069_s21 = sshll.u32 %s1477_s20, 4  ;;  %s1070_s21 = int_to_ptr.vmem [resolvable:$true] %s1069_s21 }
 0x3a2   : > { %s1413_s22 = scalar_lea.vmem %s1070_s21, 16  ;;  %s1419_s23 = scalar_lea.vmem %s1070_s21, 32 }
 0x3a3   : > { %1061 = vst.msk [vmem:[#allocation4] sm:$0x1] %vm938_vm3, %v1060_v48  ;;  %p1414_p8 = scmp.ne.s32.totalorder %s1070_s21, %s1413_s22  ;;  %p1420_p11 = scmp.lt.s32.totalorder %s1070_s21, %s1070_s21 }
 0x3a4   : > { %p1421_p12 = scmp.lt.s32.totalorder %s1419_s23, %s1413_s22 }
 0x3a5   : > { %p1415_p9 = pnand %p1414_p8, %p1334_p7 }
 0x3a6   : > { %p1422_p13 = por %p1421_p12, %p1420_p11 }
 0x3a7   : > { %p1416_p10 = pneg %p1415_p9 }
 0x3a9   : > { %p1423_p0 = pnand %p1422_p13, %p1416_p10 }
 0x3ab   : > { %1426 = shalt.err (!%p1423_p0)
}
 0x3ac   : > { %1331 = dma.vmem_to_hbm [thread:$0]  (%p1334_p7), %s1070_s21, 16, %s2248_s1, [#allocation5]  }
 0x3ad   : > { %1454 = dma.done.wait (%p1334_p7), [#allocation5], 16  }
 0x3ae   : > { %1456 = vsyncadd (%p1334_p7), [#allocation5], 4294967280 }
 0x3af PF: > { %s12_s6 = sadd.s32 1, %s1459_s6  }
 0x3b0   : > { %p9_p1 = scmp.ge.s32.totalorder %s12_s6, 6  }
 0x3b2   :  { %11 = sbr.rel (!%p9_p1) target bundleno = 1 (0x1), region = 77 }
 0x3b7   :  { %1082 = vsyncpa [#allocation5], 1 }
 0x3b8   :  { %1084 = vsyncpa [#allocation5 + $0x1], 1 }

</bundles_post_ra>
